<compile_context>
chip_gen: v5e
topology: v5e:2x2
jax: 0.10.0
libtpu: 0.0.40
codegen_flags: <defaults>
</compile_context>

<pallas_src>
import math

import jax
import jax.numpy as jnp
from jax.experimental import pallas as pl
from jax.experimental.pallas import tpu as pltpu

LN_EPS = 1e-12
_INV_SQRT2 = 1.0 / math.sqrt(2.0)


def _gelu(x):
    # exact gelu: x * 0.5 * (1 + erf(x / sqrt(2)))  -- matches the torch module
    return x * 0.5 * (1.0 + jax.lax.erf(x * _INV_SQRT2))


def intermediate_kernel(x_ref, w1_ref, b1_ref, w2_ref, b2_ref,
                        lnw_ref, lnb_ref, out_ref):
    x = x_ref[...]                                                    # [TM, H]
    hidden = x.shape[-1]

    # ---- dense_1 + gelu (h is [TM, 4H] -> lane-dense at 4H = 128) ----
    h = jnp.dot(x, w1_ref[...], preferred_element_type=jnp.float32) + b1_ref[...]
    h = _gelu(h)

    # ---- dense_2 ----
    y = jnp.dot(h, w2_ref[...], preferred_element_type=jnp.float32) + b2_ref[...]

    # dropout is identity in eval mode; residual add
    y = y + x                                                         # [TM, H]

    # ---- LayerNorm: two-pass variance (no E[x^2]-E[x]^2 cancellation),
    #      rsqrt on the EUP ----
    inv_h = 1.0 / hidden
    mean = jnp.sum(y, axis=-1, keepdims=True) * inv_h
    d = y - mean
    var = jnp.sum(d * d, axis=-1, keepdims=True) * inv_h
    xn = d * jax.lax.rsqrt(var + LN_EPS)
    out_ref[...] = (lnw_ref[...] * xn + lnb_ref[...]).astype(out_ref.dtype)


def run_intermediate(x, params, *, row_tile=256):
    """x: [B, S, H] f32; params: (W1[H,4H], b1[1,4H], W2[4H,H], b2[1,H], ln_w[1,H], ln_b[1,H])."""
    Bx, Sx, Hx = x.shape
    W1, b1, W2, b2, lnw, lnb = params
    inter = W1.shape[1]
    M = Bx * Sx
    x2 = x.reshape(M, Hx)   # flatten batch*seq -> rows (pure layout plumbing)

    cost = pl.CostEstimate(
        flops=int(4 * M * Hx * inter + 16 * M * inter + 12 * M * Hx),
        transcendentals=int(M * inter),      # erf inside gelu
        bytes_accessed=int(4 * (2 * M * Hx + 2 * Hx * inter + inter + 3 * Hx)),
    )

    use_grid = (M % row_tile == 0) and (M // row_tile >= 2)

    if not use_grid:
        # Small M: single gridless call, everything resident in VMEM; per-call
        # overhead dominates, so no tiling is the right design here.
        vmem = lambda: pl.BlockSpec(memory_space=pltpu.MemorySpace.VMEM)
        out2 = pl.pallas_call(
            intermediate_kernel,
            out_shape=jax.ShapeDtypeStruct((M, Hx), jnp.float32),
            in_specs=[vmem() for _ in range(7)],
            out_specs=vmem(),
            cost_estimate=cost,
        )(x2, W1, b1, W2, b2, lnw, lnb)
    else:
        # Large M: tile rows, keep weights/biases/LN params resident (same
        # block index every step -> DMA'd once), shard rows across TCs on v7x.
        resident = lambda i: (0, 0)
        out2 = pl.pallas_call(
            intermediate_kernel,
            out_shape=jax.ShapeDtypeStruct((M, Hx), jnp.float32),
            grid_spec=pltpu.PrefetchScalarGridSpec(
                num_scalar_prefetch=0,
                grid=(M // row_tile,),
                in_specs=[
                    pl.BlockSpec((row_tile, Hx), lambda i: (i, 0)),   # x rows
                    pl.BlockSpec((Hx, inter), resident),              # W1
                    pl.BlockSpec((1, inter), resident),               # b1
                    pl.BlockSpec((inter, Hx), resident),              # W2
                    pl.BlockSpec((1, Hx), resident),                  # b2
                    pl.BlockSpec((1, Hx), resident),                  # ln weight
                    pl.BlockSpec((1, Hx), resident),                  # ln bias
                ],
                out_specs=pl.BlockSpec((row_tile, Hx), lambda i: (i, 0)),
            ),
            compiler_params=pltpu.CompilerParams(
                dimension_semantics=("parallel",),
            ),
            cost_estimate=cost,
        )(x2, W1, b1, W2, b2, lnw, lnb)

    return out2.reshape(Bx, Sx, Hx)


def reference_intermediate(x, params):
    w1, b1, w2, b2, lnw, lnb = params
    h = _gelu(x @ w1 + b1)
    y = h @ w2 + b2
    y = y + x   # dropout = identity (eval)
    u = jnp.mean(y, axis=-1, keepdims=True)
    s = jnp.mean((y - u) ** 2, axis=-1, keepdims=True)
    return lnw * ((y - u) / jnp.sqrt(s + LN_EPS)) + lnb


if __name__ == "__main__":
    key = jax.random.PRNGKey(0)
    keys = jax.random.split(key, 8)

    B, S, H = 2, 8, 32           # small shapes consistent with the module
    INTER = 4 * H

    def dense_init(k, fan_in, shape):
        return jax.random.normal(k, shape, jnp.float32) / math.sqrt(fan_in)

    params = (
        dense_init(keys[0], H, (H, INTER)),                              # W1 [H, 4H]
        0.1 * jax.random.normal(keys[1], (1, INTER), jnp.float32),       # b1
        dense_init(keys[2], INTER, (INTER, H)),                          # W2 [4H, H]
        0.1 * jax.random.normal(keys[3], (1, H), jnp.float32),           # b2
        1.0 + 0.1 * jax.random.normal(keys[4], (1, H), jnp.float32),     # LN weight
        0.1 * jax.random.normal(keys[5], (1, H), jnp.float32),           # LN bias
    )

    # ---- small case: gridless single-call path ----
    x_small = jax.random.normal(keys[6], (B, S, H), jnp.float32)
    out_small = jax.block_until_ready(run_intermediate(x_small, params))
    ref_small = reference_intermediate(x_small, params)
    assert out_small.shape == (B, S, H)
    assert jnp.allclose(out_small, ref_small, atol=2e-4, rtol=2e-4), \
        f"small: max abs diff = {jnp.max(jnp.abs(out_small - ref_small))}"

    # ---- larger case: exercises the row-tiled "parallel" grid path with
    #      VMEM-resident weights (256-row tiles, 8 grid steps) ----
    Bl, Sl = 4, 512
    x_large = jax.random.normal(keys[7], (Bl, Sl, H), jnp.float32)
    out_large = jax.block_until_ready(run_intermediate(x_large, params))
    ref_large = reference_intermediate(x_large, params)
    assert out_large.shape == (Bl, Sl, H)
    assert jnp.allclose(out_large, ref_large, atol=2e-4, rtol=2e-4), \
        f"large: max abs diff = {jnp.max(jnp.abs(out_large - ref_large))}"

    print("KERNEL_OK")
</pallas_src>

<mosaic_0001>
module attributes {stable_mosaic.version = 11 : i64} {
  func.func @intermediate_kernel(%arg0: memref<16x32xf32, #tpu.memory_space<vmem>>, %arg1: memref<32x128xf32, #tpu.memory_space<vmem>>, %arg2: memref<1x128xf32, #tpu.memory_space<vmem>>, %arg3: memref<128x32xf32, #tpu.memory_space<vmem>>, %arg4: memref<1x32xf32, #tpu.memory_space<vmem>>, %arg5: memref<1x32xf32, #tpu.memory_space<vmem>>, %arg6: memref<1x32xf32, #tpu.memory_space<vmem>>, %arg7: memref<16x32xf32, #tpu.memory_space<vmem>>) attributes {dimension_semantics = [], scalar_prefetch = 0 : i64, scratch_operands = 0 : i64, tpu.core_type = #tpu.core_type<tc>} {
    %c0 = arith.constant 0 : index
    %c0_0 = arith.constant 0 : index
    %0 = vector.load %arg0[%c0, %c0_0] : memref<16x32xf32, #tpu.memory_space<vmem>>, vector<16x32xf32>
    %c0_1 = arith.constant 0 : index
    %c0_2 = arith.constant 0 : index
    %1 = vector.load %arg1[%c0_1, %c0_2] : memref<32x128xf32, #tpu.memory_space<vmem>>, vector<32x128xf32>
    %cst = arith.constant dense<0.000000e+00> : vector<16x128xf32>
    %2 = tpu.matmul %0, %1, %cst {dimension_numbers = #tpu.dot_dimension_numbers<[1], [0], [0], [1], [0, 0, 1, 1], [], []>} : vector<16x32xf32>, vector<32x128xf32>, vector<16x128xf32> -> vector<16x128xf32>
    %c0_3 = arith.constant 0 : index
    %c0_4 = arith.constant 0 : index
    %3 = vector.load %arg2[%c0_3, %c0_4] : memref<1x128xf32, #tpu.memory_space<vmem>>, vector<1x128xf32>
    %4 = vector.broadcast %3 : vector<1x128xf32> to vector<16x128xf32>
    %5 = arith.addf %2, %4 : vector<16x128xf32>
    %cst_5 = arith.constant 5.000000e-01 : f32
    %6 = vector.broadcast %cst_5 : f32 to vector<16x128xf32>
    %7 = arith.mulf %5, %6 : vector<16x128xf32>
    %cst_6 = arith.constant 0.707106769 : f32
    %8 = vector.broadcast %cst_6 : f32 to vector<16x128xf32>
    %9 = arith.mulf %5, %8 : vector<16x128xf32>
    %10 = math.erf %9 : vector<16x128xf32>
    %cst_7 = arith.constant 1.000000e+00 : f32
    %11 = vector.broadcast %cst_7 : f32 to vector<16x128xf32>
    %12 = arith.addf %11, %10 : vector<16x128xf32>
    %13 = arith.mulf %7, %12 : vector<16x128xf32>
    %c0_8 = arith.constant 0 : index
    %c0_9 = arith.constant 0 : index
    %14 = vector.load %arg3[%c0_8, %c0_9] : memref<128x32xf32, #tpu.memory_space<vmem>>, vector<128x32xf32>
    %cst_10 = arith.constant dense<0.000000e+00> : vector<16x32xf32>
    %15 = tpu.matmul %13, %14, %cst_10 {dimension_numbers = #tpu.dot_dimension_numbers<[1], [0], [0], [1], [0, 0, 1, 1], [], []>} : vector<16x128xf32>, vector<128x32xf32>, vector<16x32xf32> -> vector<16x32xf32>
    %c0_11 = arith.constant 0 : index
    %c0_12 = arith.constant 0 : index
    %16 = vector.load %arg4[%c0_11, %c0_12] : memref<1x32xf32, #tpu.memory_space<vmem>>, vector<1x32xf32>
    %17 = vector.broadcast %16 : vector<1x32xf32> to vector<16x32xf32>
    %18 = arith.addf %15, %17 : vector<16x32xf32>
    %19 = arith.addf %18, %0 : vector<16x32xf32>
    %cst_13 = arith.constant dense<0.000000e+00> : vector<16xf32>
    %20 = vector.multi_reduction <add>, %19, %cst_13 [1] : vector<16x32xf32> to vector<16xf32>
    %21 = vector.shape_cast %20 : vector<16xf32> to vector<16x1xf32>
    %cst_14 = arith.constant 3.125000e-02 : f32
    %22 = vector.broadcast %cst_14 : f32 to vector<16x1xf32>
    %23 = arith.mulf %21, %22 : vector<16x1xf32>
    %24 = vector.broadcast %23 : vector<16x1xf32> to vector<16x32xf32>
    %25 = arith.subf %19, %24 : vector<16x32xf32>
    %26 = arith.mulf %25, %25 : vector<16x32xf32>
    %cst_15 = arith.constant dense<0.000000e+00> : vector<16xf32>
    %27 = vector.multi_reduction <add>, %26, %cst_15 [1] : vector<16x32xf32> to vector<16xf32>
    %28 = vector.shape_cast %27 : vector<16xf32> to vector<16x1xf32>
    %cst_16 = arith.constant 3.125000e-02 : f32
    %29 = vector.broadcast %cst_16 : f32 to vector<16x1xf32>
    %30 = arith.mulf %28, %29 : vector<16x1xf32>
    %cst_17 = arith.constant 9.99999996E-13 : f32
    %31 = vector.broadcast %cst_17 : f32 to vector<16x1xf32>
    %32 = arith.addf %30, %31 : vector<16x1xf32>
    %33 = math.rsqrt %32 : vector<16x1xf32>
    %34 = vector.broadcast %33 : vector<16x1xf32> to vector<16x32xf32>
    %35 = arith.mulf %25, %34 : vector<16x32xf32>
    %c0_18 = arith.constant 0 : index
    %c0_19 = arith.constant 0 : index
    %36 = vector.load %arg5[%c0_18, %c0_19] : memref<1x32xf32, #tpu.memory_space<vmem>>, vector<1x32xf32>
    %37 = vector.broadcast %36 : vector<1x32xf32> to vector<16x32xf32>
    %38 = arith.mulf %37, %35 : vector<16x32xf32>
    %c0_20 = arith.constant 0 : index
    %c0_21 = arith.constant 0 : index
    %39 = vector.load %arg6[%c0_20, %c0_21] : memref<1x32xf32, #tpu.memory_space<vmem>>, vector<1x32xf32>
    %40 = vector.broadcast %39 : vector<1x32xf32> to vector<16x32xf32>
    %41 = arith.addf %38, %40 : vector<16x32xf32>
    %c0_22 = arith.constant 0 : index
    %c0_23 = arith.constant 0 : index
    %42 = vector.load %arg7[%c0_22, %c0_23] : memref<16x32xf32, #tpu.memory_space<vmem>>, vector<16x32xf32>
    tpu.vector_store %arg7[%c0_22, %c0_23], %41 {strides = array<i32>} : memref<16x32xf32, #tpu.memory_space<vmem>>, vector<16x32xf32>,
    return
  }
}

</mosaic_0001>

<bundles_post_ra>
// kernel: tpu_custom_call.1
= control target key start
LH: loop header
LB: loop body
LE: loop exit
PB: predicated region body
PF: predicated region fallthrough
CT: control target
= control target key end

     0   :  { %s507_s0 = inlined_call_operand.vmem [shape: f32[16,32], index: 0, kind: input, shape index: {}]   ;;  %s508_s1 = inlined_call_operand.vmem [shape: f32[32,128], index: 1, kind: input, shape index: {}]   ;;  %s509_s2 = inlined_call_operand.vmem [shape: f32[1,128], index: 2, kind: input, shape index: {}]   ;;  %s510_s3 = inlined_call_operand.vmem [shape: f32[128,32], index: 3, kind: input, shape index: {}]   ;;  %s511_s4 = inlined_call_operand.vmem [shape: f32[1,32], index: 4, kind: input, shape index: {}]   ;;  %s512_s5 = inlined_call_operand.vmem [shape: f32[1,32], index: 5, kind: input, shape index: {}]   ;;  %s513_s6 = inlined_call_operand.vmem [shape: f32[1,32], index: 6, kind: input, shape index: {}]   ;;  %s514_s7 = inlined_call_operand.hbm [shape: f32[16,32], index: 7, kind: output, shape index: {}]  }
   0x1   :  { %v32_v0 = vld [vmem:[%s508_s1 + $0x18] sm:$0xff]  ;;  %v31_v1 = vld [vmem:[%s508_s1 + $0x10] sm:$0xff]  ;;  %v30_v2 = vld [vmem:[%s508_s1 + $0x8] sm:$0xff] }
   0x2   :  { %56 = vmatpush.msra.mxu0 %v32_v0 }
   0x4   :  { %57 = vmatpush.msra.mxu0 %v31_v1 }
   0x5   :  { %12 = vsyncpa [#allocation3], 0  ;;  %v29_v3 = vld [vmem:[%s508_s1] sm:$0xff]  ;;  %vm37_vm0 = vcmask 261120   ;;  %v402_v5 = vld [vmem:[%s507_s0 + $0x8] sm:$0xff]  ;;  %s338_s26 = smov 128  }
   0x6   :  { %58 = vmatpush.msra.mxu0 %v30_v2  ;;  %v395_v4 = vld [vmem:[%s507_s0] sm:$0xff]  ;;  %v170_v6 = vld [vmem:[%s510_s3 + $0x78] sm:$0xff]  ;;  %v169_v7 = vld [vmem:[%s510_s3 + $0x70] sm:$0xff] }
   0x7   :  { %175 = vmatpush.msra.mxu1 %v170_v6  ;;  %280 = vmatpush.msra.mxu2 %v170_v6  ;;  %v168_v8 = vld [vmem:[%s510_s3 + $0x68] sm:$0xff]  ;;  %v167_v9 = vld [vmem:[%s510_s3 + $0x60] sm:$0xff]  ;;  %v166_v11 = vld [vmem:[%s510_s3 + $0x58] sm:$0xff] }
   0x8   :  { %59 = vmatpush.msra.mxu0 %v29_v3  ;;  %v299_v10 = vld [vmem:[%s509_s2] ss:$0 sm:$0xff]  ;;  %v165_v13 = vld [vmem:[%s510_s3 + $0x50] sm:$0xff]  ;;  %v164_v15 = vld [vmem:[%s510_s3 + $0x48] sm:$0xff]  ;;  %s339_s2 = smov 8  }
   0x9   :  { %276 = vmatmul.msk.f32.vlgmr.msra.gmra.mxu0 %vm37_vm0, %v395_v4  ;;  %176 = vmatpush.msra.mxu1 %v169_v7  ;;  %v163_v17 = vld [vmem:[%s510_s3 + $0x40] sm:$0xff]  ;;  %v162_v19 = vld [vmem:[%s510_s3 + $0x38] sm:$0xff]  ;;  %v161_v20 = vld [vmem:[%s510_s3 + $0x30] sm:$0xff] }
   0xa   :  { %281 = vmatpush.msra.mxu2 %v169_v7  ;;  %v160_v23 = vld [vmem:[%s510_s3 + $0x28] sm:$0xff]  ;;  %v159_v27 = vld [vmem:[%s510_s3 + $0x20] sm:$0xff]  ;;  %v158_v30 = vld [vmem:[%s510_s3 + $0x18] sm:$0xff] }
   0xb   :  { %177 = vmatpush.msra.mxu1 %v168_v8  ;;  %v157_v34 = vld [vmem:[%s510_s3 + $0x10] sm:$0xff]  ;;  %v156_v37 = vld [vmem:[%s510_s3 + $0x8] sm:$0xff]  ;;  %v155_v42 = vld [vmem:[%s510_s3] sm:$0xff] }
   0xc   :  { %282 = vmatpush.msra.mxu2 %v168_v8 }
   0xd   :  { %178 = vmatpush.msra.mxu1 %v167_v9 }
   0xe   :  { %283 = vmatpush.msra.mxu2 %v167_v9 }
   0xf   :  { %179 = vmatpush.msra.mxu1 %v166_v11 }
  0x10   :  { %284 = vmatpush.msra.mxu2 %v166_v11 }
  0x11   :  { %277 = vmatmul.msk.f32.gmra.mxu0 %vm37_vm0, %v402_v5  ;;  %180 = vmatpush.msra.mxu1 %v165_v13 }
  0x12   :  { %285 = vmatpush.msra.mxu2 %v165_v13 }
  0x13   :  { %181 = vmatpush.msra.mxu1 %v164_v15 }
  0x14   :  { %286 = vmatpush.msra.mxu2 %v164_v15 }
  0x15   :  { %182 = vmatpush.msra.mxu1 %v163_v17 }
  0x16   :  { %287 = vmatpush.msra.mxu2 %v163_v17 }
  0x17   :  { %183 = vmatpush.msra.mxu1 %v162_v19 }
  0x18   :  { %288 = vmatpush.msra.mxu2 %v162_v19 }
  0x19   :  { %184 = vmatpush.msra.mxu1 %v161_v20 }
  0x1a   :  { %289 = vmatpush.msra.mxu2 %v161_v20 }
  0x1b   :  { %185 = vmatpush.msra.mxu1 %v160_v23 }
  0x1c   :  { %290 = vmatpush.msra.mxu2 %v160_v23 }
  0x1d   :  { %186 = vmatpush.msra.mxu1 %v159_v27 }
  0x1e   :  { %291 = vmatpush.msra.mxu2 %v159_v27 }
  0x1f   :  { %187 = vmatpush.msra.mxu1 %v158_v30 }
  0x20   :  { %292 = vmatpush.msra.mxu2 %v158_v30 }
  0x21   :  { %188 = vmatpush.msra.mxu1 %v157_v34 }
  0x22   :  { %293 = vmatpush.msra.mxu2 %v157_v34 }
  0x23   :  { %189 = vmatpush.msra.mxu1 %v156_v37 }
  0x24   :  { %294 = vmatpush.msra.mxu2 %v156_v37 }
  0x25   :  { %190 = vmatpush.msra.mxu1 %v155_v42 }
  0x26   :  { %295 = vmatpush.msra.mxu2 %v155_v42 }
  0x86   :  { %v61_v12 = vpop.f32.mrf.mxu0 }
  0x87   :  { %v427_v14 = vadd.f32 %v299_v10, %v61_v12 }
  0x89   :  { %v433_v16 = vmul.f32 0.70710677, %v427_v14 }
  0x8b   :  { %v71_v18 = vmul.f32 %v433_v16, %v433_v16 }
  0x8d   :  { %v446_v21 = vmin.f32 %v71_v18, 16.0 }
  0x8e   :  { %v64_v22 = vpop.f32.mrf.mxu0 }
  0x8f   :  { %v73_v24 = vmul.f32 2.1237322e-06, %v446_v21  ;;  %v452_v25 = vadd.f32 %v299_v10, %v64_v22  ;;  %v84_v26 = vmul.f32 3.8918573e-05, %v446_v21 }
  0x91   :  { %v74_v28 = vadd.f32 0.00028619796, %v73_v24  ;;  %v459_v29 = vmul.f32 0.70710677, %v452_v25  ;;  %v85_v31 = vadd.f32 0.001143296, %v84_v26 }
  0x93   :  { %v75_v32 = vmul.f32 %v74_v28, %v446_v21  ;;  %v111_v33 = vmul.f32 %v459_v29, %v459_v29  ;;  %v86_v35 = vmul.f32 %v85_v31, %v446_v21 }
  0x95   :  { %v112_v36 = vmin.f32 %v111_v33, 16.0  ;;  %v87_v38 = vadd.f32 0.014752088, %v86_v35  ;;  %v76_v39 = vadd.f32 0.0036580483, %v75_v32  ;;  %v67_v35 = vmul.f32 0.5, %v427_v14 }
  0x96   :  { %v300_v14 = vld [vmem:[%s511_s4] ss:$0 sm:$0xff] }
  0x97   :  { %v113_v40 = vmul.f32 2.1237322e-06, %v112_v36  ;;  %v124_v41 = vmul.f32 3.8918573e-05, %v112_v36  ;;  %v88_v43 = vmul.f32 %v87_v38, %v446_v21  ;;  %v77_v47 = vmul.f32 %v76_v39, %v446_v21 }
  0x99   :  { %v114_v44 = vadd.f32 0.00028619796, %v113_v40  ;;  %v125_v45 = vadd.f32 0.001143296, %v124_v41  ;;  %v89_v46 = vadd.f32 0.112945676, %v88_v43 }
  0x9a   :  { %v78_v54 = vadd.f32 0.05243302, %v77_v47  ;;  %v68_v43 = vmul.f32 0.5, %v452_v25 }
  0x9b   :  { %v115_v48 = vmul.f32 %v114_v44, %v112_v36  ;;  %v126_v49 = vmul.f32 %v125_v45, %v112_v36  ;;  %v90_v50 = vmul.f32 %v89_v46, %v446_v21 }
  0x9c   :  { %v79_v60 = vmul.f32 %v78_v54, %v446_v21 }
  0x9d   :  { %v127_v51 = vadd.f32 0.014752088, %v126_v49  ;;  %v116_v52 = vadd.f32 0.0036580483, %v115_v48  ;;  %v91_v53 = vadd.f32 0.4994258, %v90_v50 }
  0x9e   :  { %v80_v0 = vadd.f32 0.18741608, %v79_v60 }
  0x9f   :  { %v128_v55 = vmul.f32 %v127_v51, %v112_v36  ;;  %v92_v56 = vmul.f32 %v91_v53, %v446_v21  ;;  %v117_v58 = vmul.f32 %v116_v52, %v112_v36 }
  0xa0   :  { %v81_v7 = vmul.f32 %v80_v0, %v446_v21 }
  0xa1   :  { %v129_v57 = vadd.f32 0.112945676, %v128_v55  ;;  %v93_v59 = vadd.f32 1.0, %v92_v56  ;;  %v118_v63 = vadd.f32 0.05243302, %v117_v58 }
  0xa2   :  { %v82_v12 = vadd.f32 1.1283791, %v81_v7 }
  0xa3   :  { %v130_v61 = vmul.f32 %v129_v57, %v112_v36  ;;  %303 = vrcp.f32 %v93_v59  ;;  %v119_v6 = vmul.f32 %v118_v63, %v112_v36  ;;  %v105_v11 = vand.u32 2147483648, %v93_v59 }
  0xa4   :  { %v103_v15 = vand.u32 2147483647, %v93_v59  ;;  %vm99_vm2 = vweird.f32 %v93_v59  ;;  %v83_v23 = vmul.f32 %v82_v12, %v433_v16 }
  0xa5   :  { %v131_v62 = vadd.f32 0.4994258, %v130_v61  ;;  %v120_v10 = vadd.f32 0.18741608, %v119_v6  ;;  %v106_v20 = vor.u32 1.1754944e-38, %v105_v11 }
  0xa6   :  { %vm104_vm4 = vcmp.eq.f32.partialorder %v103_v15, 8.507059e+37 }
  0xa7   :  { %v132_v1 = vmul.f32 %v131_v62, %v112_v36  ;;  %v121_v19 = vmul.f32 %v120_v10, %v112_v36  ;;  %v301_v10 = vld [vmem:[%s512_s5] ss:$0 sm:$0xff]  ;;  %s337_s5 = smov [#allocation2]  }
  0xa8   :  { %s262_s23 = sshll.u32 %s337_s5, 4  ;;  %s263_s23 = int_to_ptr.vmem [resolvable:$true] %s262_s23 }
  0xa9   :  { %v133_v2 = vadd.f32 1.0, %v132_v1  ;;  %v304_v3 = vpop.eup %303  ;;  %v122_v30 = vadd.f32 1.1283791, %v121_v19 }
  0xaa   :  { %v95_v8 = vmul.f32 %v304_v3, %v93_v59  ;;  %vm100_vm1 = vweird.f32 %v304_v3 }
  0xab   :  { %305 = vrcp.f32 %v133_v2  ;;  %vm101_vm3 = vmor %vm99_vm2, %vm100_vm1  ;;  %v145_v28 = vand.u32 2147483648, %v133_v2  ;;  %v143_v32 = vand.u32 2147483647, %v133_v2  ;;  %vm139_vm6 = vweird.f32 %v133_v2 }
  0xac   :  { %v96_v9 = vsub.f32 1.0, %v95_v8  ;;  %v123_v16 = vmul.f32 %v122_v30, %v459_v29 }
  0xad   :  { %v146_v37 = vor.u32 1.1754944e-38, %v145_v28  ;;  %vm144_vm8 = vcmp.eq.f32.partialorder %v143_v32, 8.507059e+37 }
  0xae   :  { %v97_v13 = vmul.f32 %v304_v3, %v96_v9 }
  0xb0   :  { %v98_v18 = vadd.f32 %v304_v3, %v97_v13  ;;  %v302_v13 = vld [vmem:[%s513_s6] ss:$0 sm:$0xff]  ;;  %s264_s6 = sshll.u32 %s514_s7, 4  ;;  %s265_s6 = int_to_ptr.hbm [resolvable:$true] %s264_s6 }
  0xb1   :  { %v306_v17 = vpop.eup %305 }
  0xb2   :  { %v135_v22 = vmul.f32 %v306_v17, %v133_v2  ;;  %v102_v24 = vsel %vm101_vm3, %v304_v3, %v98_v18  ;;  %vm140_vm5 = vweird.f32 %v306_v17 }
  0xb3   :  { %v107_v21 = vsel %vm104_vm4, %v106_v20, %v102_v24  ;;  %vm141_vm7 = vmor %vm139_vm6, %vm140_vm5 }
  0xb4   :  { %v136_v26 = vsub.f32 1.0, %v135_v22  ;;  %v108_v27 = vmul.f32 %v107_v21, %v83_v23 }
  0xb6   :  { %v137_v31 = vmul.f32 %v306_v17, %v136_v26  ;;  %v278_v33 = vclamps-f32 %v108_v27, 1.0 }
  0xb8   :  { %v138_v34 = vadd.f32 %v306_v17, %v137_v31  ;;  %v151_v36 = vadd.f32 1.0, %v278_v33 }
  0xba   :  { %v142_v38 = vsel %vm141_vm7, %v306_v17, %v138_v34  ;;  %v153_v39 = vmul.f32 %v151_v36, %v67_v35 }
  0xbb   :  { %v147_v40 = vsel %vm144_vm8, %v146_v37, %v142_v38 }
  0xbc   :  { %v148_v41 = vmul.f32 %v147_v40, %v123_v16  ;;  %191 = vmatmul.f32.vlgmr.msra.gmra.mxu1 %v153_v39 }
  0xbe   :  { %v279_v42 = vclamps-f32 %v148_v41, 1.0 }
  0xc0   :  { %v152_v44 = vadd.f32 1.0, %v279_v42 }
  0xc2   :  { %v154_v45 = vmul.f32 %v152_v44, %v68_v43 }
  0xc4   :  { %194 = vmatmul.f32.vlgmr.msra.gmra.mxu2 %v154_v45 }
 0x139   :  { %v192_v46 = vpop.f32.mrf.mxu1 }
 0x13a   :  { %v193_v47 = vadd.f32 %v300_v14, %v192_v46 }
 0x13c   :  { %v198_v29 = vadd.f32 %v193_v47, %v395_v4 }
 0x13e   :  { %v200_v48 = vsel %vm37_vm0, %v198_v29, 0.0 }
 0x13f   :  { %201 = vadd.xlane.f32.xlu0 %v200_v48 }
 0x147   :  { %v195_v49 = vpop.f32.mrf.mxu2 }
 0x148   :  { %v196_v50 = vadd.f32 %v300_v14, %v195_v49 }
 0x14a   :  { %v199_v51 = vadd.f32 %v196_v50, %v402_v5 }
 0x14c   :  { %v203_v25 = vsel %vm37_vm0, %v199_v51, 0.0 }
 0x14d   :  { %204 = vadd.xlane.f32.xlu0 %v203_v25 }
 0x1b2   :  { %v202_v52 = vpop.xlane.xlu0 %201 }
 0x1b3   :  { %v206_v53 = vmul.f32 0.03125, %v202_v52 }
 0x1b5   :  { %v208_v54 = vsub.f32 %v198_v29, %v206_v53 }
 0x1b7   :  { %v210_v55 = vmul.f32 %v208_v54, %v208_v54 }
 0x1b9   :  { %v212_v56 = vsel %vm37_vm0, %v210_v55, 0.0 }
 0x1ba   :  { %213 = vadd.xlane.f32.xlu1 %v212_v56 }
 0x1c0   :  { %v205_v57 = vpop.xlane.xlu0 %204 }
 0x1c1   :  { %v207_v58 = vmul.f32 0.03125, %v205_v57 }
 0x1c3   :  { %v209_v4 = vsub.f32 %v199_v51, %v207_v58 }
 0x1c5   :  { %v211_v59 = vmul.f32 %v209_v4, %v209_v4 }
 0x1c7   :  { %v215_v60 = vsel %vm37_vm0, %v211_v59, 0.0 }
 0x1c8   :  { %216 = vadd.xlane.f32.xlu1 %v215_v60 }
 0x22d   :  { %v214_v61 = vpop.xlane.xlu1 %213 }
 0x22e   :  { %v218_v62 = vmul.f32 0.03125, %v214_v61 }
 0x230   :  { %v220_v5 = vadd.f32 1e-12, %v218_v62 }
 0x232   :  { %307 = vrsqrt.f32 %v220_v5  ;;  %vm228_vm10 = vweird.f32 %v220_v5 }
 0x238   :  { %v308_v63 = vpop.eup %307 }
 0x239   :  { %v223_v0 = vmul.f32 %v308_v63, %v220_v5  ;;  %vm229_vm9 = vweird.f32 %v308_v63 }
 0x23a   :  { %vm230_vm11 = vmor %vm228_vm10, %vm229_vm9 }
 0x23b   :  { %v217_v1 = vpop.xlane.xlu1 %216  ;;  %v224_v2 = vmul.f32 %v308_v63, %v223_v0 }
 0x23c   :  { %v219_v3 = vmul.f32 0.03125, %v217_v1 }
 0x23d   :  { %v225_v6 = vmul.f32 0.5, %v224_v2 }
 0x23e   :  { %v221_v7 = vadd.f32 1e-12, %v219_v3 }
 0x23f   :  { %v226_v8 = vsub.f32 1.5, %v225_v6 }
 0x240   :  { %309 = vrsqrt.f32 %v221_v7  ;;  %vm238_vm13 = vweird.f32 %v221_v7 }
 0x241   :  { %v227_v9 = vmul.f32 %v308_v63, %v226_v8 }
 0x243   :  { %v231_v11 = vsel %vm230_vm11, %v308_v63, %v227_v9 }
 0x244   :  { %v242_v12 = vmul.f32 %v231_v11, %v208_v54 }
 0x246   :  { %v310_v15 = vpop.eup %309  ;;  %v248_v17 = vmul.f32 %v301_v10, %v242_v12 }
 0x247   :  { %v233_v18 = vmul.f32 %v310_v15, %v221_v7  ;;  %vm239_vm12 = vweird.f32 %v310_v15 }
 0x248   :  { %v254_v20 = vadd.f32 %v302_v13, %v248_v17  ;;  %vm240_vm14 = vmor %vm238_vm13, %vm239_vm12 }
 0x249   :  { %v234_v19 = vmul.f32 %v310_v15, %v233_v18 }
 0x24a   :  { %256 = vst.msk [vmem:[#allocation2] sm:$0xff] %vm37_vm0, %v254_v20 }
 0x24b   :  { %v235_v22 = vmul.f32 0.5, %v234_v19 }
 0x24d   :  { %v236_v23 = vsub.f32 1.5, %v235_v22 }
 0x24f   :  { %v237_v24 = vmul.f32 %v310_v15, %v236_v23 }
 0x251   :  { %v241_v21 = vsel %vm240_vm14, %v310_v15, %v237_v24 }
 0x252   :  { %v243_v26 = vmul.f32 %v241_v21, %v209_v4 }
 0x254   :  { %v249_v27 = vmul.f32 %v301_v10, %v243_v26 }
 0x256   :  { %v255_v28 = vadd.f32 %v302_v13, %v249_v27 }
 0x258   :  { %257 = vst.msk [vmem:[#allocation2 + $0x8] sm:$0xff] %vm37_vm0, %v255_v28 }
 0x259   :  { %270 = dma.vmem_to_hbm [thread:$0]  %s263_s23, 256, %s265_s6, [#allocation3], %s338_s26, %s338_s26, %s339_s2  }
 0x25a   :  { %335 = dma.done.wait [#allocation3], 256  }
 0x25b   :  { %336 = vsyncadd [#allocation3], 4294967040 }
 0x25c   :  { %275 = vsyncpa [#allocation3], 1 }

</bundles_post_ra>
